<compile_context>
chip_gen: v7x
topology: tpu7x:2x2x1
jax: 0.10.0
libtpu: 0.0.40
codegen_flags: <defaults>
</compile_context>

<pallas_src>
import functools

import jax
import jax.numpy as jnp
from jax import lax
from jax.experimental import pallas as pl
from jax.experimental.pallas import tpu as pltpu

LN_EPS = 1e-5  # PyTorch nn.LayerNorm default


def _round_up(v, m):
    return (v + m - 1) // m * m


def _pad_to(x, shape):
    pads = [(0, t - s) for s, t in zip(x.shape, shape)]
    return jnp.pad(x, pads)


def _make_kernel(num_heads: int, d_orig: int):
    inv_d = 1.0 / float(d_orig)

    def layer_norm(y, g, b):
        # Fused mean/var: one pass of cross-lane sums.  Padded lanes are zero,
        # so sums over the padded width equal sums over the true D columns.
        s = jnp.sum(y, axis=-1, keepdims=True)
        ss = jnp.sum(y * y, axis=-1, keepdims=True)
        mu = s * inv_d
        var = ss * inv_d - mu * mu
        return (y - mu) * lax.rsqrt(var + LN_EPS) * g + b

    def kernel(x_ref, w_ref, v_ref,
               w1_ref, b1_ref, w2_ref, b2_ref,
               g1_ref, be1_ref, g2_ref, be2_ref,
               o_ref):
        X = x_ref[0].astype(jnp.float32)               # (N, DP), padded cols = 0

        # ---------------- MultiHeadAttention ----------------
        # 1/sqrt(D) is pre-folded into W by the wrapper.
        # (For H > 1 the heads could be fused into one (DP, H*DP) matmul; with
        #  H == 1 this static loop is a single iteration.)
        attn = jnp.zeros_like(X)
        for h in range(num_heads):
            xw = jnp.dot(X, w_ref[h], preferred_element_type=jnp.float32)   # (N, DP)
            # scores = (X @ W) @ X.T, contracting on the feature axis without
            # materializing a transpose.
            scores = lax.dot_general(
                xw, X, dimension_numbers=(((1,), (1,)), ((), ())),
                preferred_element_type=jnp.float32)                          # (N, N)
            m = jnp.max(scores, axis=1, keepdims=True)
            e = jnp.exp(scores - m)
            denom = jnp.sum(e, axis=1, keepdims=True)
            weights = e * pl.reciprocal(denom, approx=True) + 1e-8
            ax = jnp.dot(weights, X, preferred_element_type=jnp.float32)     # (N, DP)
            attn = attn + jnp.dot(ax, v_ref[h],
                                  preferred_element_type=jnp.float32)

        # ---------------- residual + LayerNorm 1 ----------------
        y = layer_norm(X + attn, g1_ref[...], be1_ref[...])

        # ---------------- FeedForward ----------------
        h1 = jnp.dot(y, w1_ref[...], preferred_element_type=jnp.float32) + b1_ref[...]
        h1 = jnp.maximum(h1, 0.0)                      # ReLU
        ffn = jnp.dot(h1, w2_ref[...], preferred_element_type=jnp.float32) + b2_ref[...]
        # TODO(synk): nn.Dropout(p=0.1) is identity in eval mode; training-mode
        # stochastic dropout (pltpu.prng_*) is not reproduced here.

        # ---------------- residual + LayerNorm 2 ----------------
        z = layer_norm(y + ffn, g2_ref[...], be2_ref[...])

        o_ref[0] = z.astype(o_ref.dtype)

    return kernel


@functools.partial(jax.jit, static_argnames=())
def transformer_block(X, params):
    """X: (B, N, D) float32.  params: dict of weights (see init_params).

    Returns (B, N, D): the PyTorch TransformerBlock applied independently to
    each of the B blocks.
    """
    B, n, d = X.shape
    num_heads = params["W"].shape[0]
    df = params["fc1_w"].shape[1]

    dp = _round_up(d, 128)       # lane-dense feature dim
    dfp = _round_up(df, 128)     # lane-dense FFN hidden dim

    # One-time preprocessing: fold 1/sqrt(D) into W, zero-pad everything so the
    # padded lanes stay exactly zero through the whole block.
    scale = 1.0 / (d ** 0.5)
    Wp = _pad_to(params["W"] * scale, (num_heads, dp, dp))
    Vp = _pad_to(params["V"], (num_heads, dp, dp))
    fc1_w = _pad_to(params["fc1_w"], (dp, dfp))
    fc1_b = _pad_to(params["fc1_b"], (1, dfp))
    fc2_w = _pad_to(params["fc2_w"], (dfp, dp))
    fc2_b = _pad_to(params["fc2_b"], (1, dp))
    ln1_g = _pad_to(params["ln1_g"], (1, dp))
    ln1_b = _pad_to(params["ln1_b"], (1, dp))
    ln2_g = _pad_to(params["ln2_g"], (1, dp))
    ln2_b = _pad_to(params["ln2_b"], (1, dp))
    Xp = _pad_to(X, (B, n, dp))

    kernel = _make_kernel(num_heads, d)

    # Weights are resident (constant block index); X / output are streamed
    # one lane-dense (N, DP) slab per grid step.
    const2 = lambda b: (0, 0)
    const3 = lambda b: (0, 0, 0)
    out = pl.pallas_call(
        kernel,
        out_shape=jax.ShapeDtypeStruct((B, n, dp), X.dtype),
        grid=(B,),
        in_specs=[
            pl.BlockSpec((1, n, dp), lambda b: (b, 0, 0)),     # X
            pl.BlockSpec((num_heads, dp, dp), const3),         # W
            pl.BlockSpec((num_heads, dp, dp), const3),         # V
            pl.BlockSpec((dp, dfp), const2),                   # fc1_w
            pl.BlockSpec((1, dfp), const2),                    # fc1_b
            pl.BlockSpec((dfp, dp), const2),                   # fc2_w
            pl.BlockSpec((1, dp), const2),                     # fc2_b
            pl.BlockSpec((1, dp), const2),                     # ln1_g
            pl.BlockSpec((1, dp), const2),                     # ln1_b
            pl.BlockSpec((1, dp), const2),                     # ln2_g
            pl.BlockSpec((1, dp), const2),                     # ln2_b
        ],
        out_specs=pl.BlockSpec((1, n, dp), lambda b: (b, 0, 0)),
        compiler_params=pltpu.CompilerParams(
            dimension_semantics=("parallel",)),                # megacore on v7x
    )(Xp, Wp, Vp, fc1_w, fc1_b, fc2_w, fc2_b, ln1_g, ln1_b, ln2_g, ln2_b)

    return out[:, :, :d]


def init_params(key, d, df, h):
    ks = jax.random.split(key, 6)
    # Attention: torch.randn(D, D) / 100
    W = jax.random.normal(ks[0], (h, d, d), jnp.float32) / 100.0
    V = jax.random.normal(ks[1], (h, d, d), jnp.float32) / 100.0
    # FeedForward linears (stored pre-transposed as (in, out) for X @ W)
    lim1 = 1.0 / (d ** 0.5)
    fc1_w = jax.random.uniform(ks[2], (d, df), jnp.float32, -lim1, lim1)
    fc1_b = jax.random.uniform(ks[3], (1, df), jnp.float32, -lim1, lim1)
    lim2 = 1.0 / (df ** 0.5)
    fc2_w = jax.random.uniform(ks[4], (df, d), jnp.float32, -lim2, lim2)
    fc2_b = jax.random.uniform(ks[5], (1, d), jnp.float32, -lim2, lim2)
    # LayerNorms (PyTorch default: weight=1, bias=0)
    ln1_g = jnp.ones((1, d), jnp.float32)
    ln1_b = jnp.zeros((1, d), jnp.float32)
    ln2_g = jnp.ones((1, d), jnp.float32)
    ln2_b = jnp.zeros((1, d), jnp.float32)
    return dict(W=W, V=V, fc1_w=fc1_w, fc1_b=fc1_b, fc2_w=fc2_w, fc2_b=fc2_b,
                ln1_g=ln1_g, ln1_b=ln1_b, ln2_g=ln2_g, ln2_b=ln2_b)


def _reference(X, params):
    """Pure-JAX replica of the PyTorch TransformerBlock forward (eval mode)."""
    def ln(y, g, b):
        mu = jnp.mean(y, axis=-1, keepdims=True)
        var = jnp.mean((y - mu) ** 2, axis=-1, keepdims=True)
        return (y - mu) / jnp.sqrt(var + LN_EPS) * g + b

    def one(x):
        d = x.shape[1]
        attn = jnp.zeros_like(x)
        for h in range(params["W"].shape[0]):
            scores = x @ params["W"][h] @ x.T / (d ** 0.5)
            w = jax.nn.softmax(scores, axis=1) + 1e-8
            attn = attn + w @ x @ params["V"][h]
        y = ln(x + attn, params["ln1_g"], params["ln1_b"])
        h1 = jnp.maximum(y @ params["fc1_w"] + params["fc1_b"], 0.0)
        f = h1 @ params["fc2_w"] + params["fc2_b"]
        return ln(y + f, params["ln2_g"], params["ln2_b"])

    return jax.vmap(one)(X)


if __name__ == "__main__":
    B, N, D, DF, H = 4, 8, 32, 256, 1   # dF=256 / H=1 as in the reference module

    key = jax.random.PRNGKey(0)
    k_x, k_p = jax.random.split(key)
    X = jax.random.normal(k_x, (B, N, D), jnp.float32)
    params = init_params(k_p, D, DF, H)

    out = transformer_block(X, params)
    out = jax.block_until_ready(out)

    assert out.shape == (B, N, D) and out.dtype == jnp.float32
    assert bool(jnp.all(jnp.isfinite(out)))

    ref = _reference(X, params)
    # approx reciprocal in softmax introduces tiny (<1e-3) relative error
    assert bool(jnp.allclose(out, ref, atol=2e-2, rtol=2e-2))

    print("KERNEL_OK")
</pallas_src>

<mosaic_0001>
module attributes {stable_mosaic.version = 11 : i64} {
  func.func @kernel(%arg0: i32, %arg1: memref<1x8x128xf32, #tpu.memory_space<vmem>>, %arg2: memref<1x128x128xf32, #tpu.memory_space<vmem>>, %arg3: memref<1x128x128xf32, #tpu.memory_space<vmem>>, %arg4: memref<128x256xf32, #tpu.memory_space<vmem>>, %arg5: memref<1x256xf32, #tpu.memory_space<vmem>>, %arg6: memref<256x128xf32, #tpu.memory_space<vmem>>, %arg7: memref<1x128xf32, #tpu.memory_space<vmem>>, %arg8: memref<1x128xf32, #tpu.memory_space<vmem>>, %arg9: memref<1x128xf32, #tpu.memory_space<vmem>>, %arg10: memref<1x128xf32, #tpu.memory_space<vmem>>, %arg11: memref<1x128xf32, #tpu.memory_space<vmem>>, %arg12: memref<1x8x128xf32, #tpu.memory_space<vmem>>) attributes {dimension_semantics = [#tpu.dimension_semantics<parallel>], iteration_bounds = array<i64: 4>, scalar_prefetch = 0 : i64, scratch_operands = 0 : i64, tpu.core_type = #tpu.core_type<tc>, window_params = [{transform_indices = @transform_0, window_bounds = array<i64: 1, 8, 128>}, {pipeline_mode = #tpu.pipeline_mode<synchronous>, transform_indices = @transform_1, window_bounds = array<i64: 1, 128, 128>}, {pipeline_mode = #tpu.pipeline_mode<synchronous>, transform_indices = @transform_2, window_bounds = array<i64: 1, 128, 128>}, {pipeline_mode = #tpu.pipeline_mode<synchronous>, transform_indices = @transform_3, window_bounds = array<i64: 128, 256>}, {pipeline_mode = #tpu.pipeline_mode<synchronous>, transform_indices = @transform_4, window_bounds = array<i64: 1, 256>}, {pipeline_mode = #tpu.pipeline_mode<synchronous>, transform_indices = @transform_5, window_bounds = array<i64: 256, 128>}, {pipeline_mode = #tpu.pipeline_mode<synchronous>, transform_indices = @transform_6, window_bounds = array<i64: 1, 128>}, {pipeline_mode = #tpu.pipeline_mode<synchronous>, transform_indices = @transform_7, window_bounds = array<i64: 1, 128>}, {pipeline_mode = #tpu.pipeline_mode<synchronous>, transform_indices = @transform_8, window_bounds = array<i64: 1, 128>}, {pipeline_mode = #tpu.pipeline_mode<synchronous>, transform_indices = @transform_9, window_bounds = array<i64: 1, 128>}, {pipeline_mode = #tpu.pipeline_mode<synchronous>, transform_indices = @transform_10, window_bounds = array<i64: 1, 128>}, {transform_indices = @transform_11, window_bounds = array<i64: 1, 8, 128>}]} {
    %c0 = arith.constant 0 : index
    %c0_0 = arith.constant 0 : index
    %c0_1 = arith.constant 0 : index
    %0 = vector.load %arg1[%c0, %c0_0, %c0_1] : memref<1x8x128xf32, #tpu.memory_space<vmem>>, vector<1x8x128xf32>
    %1 = vector.shape_cast %0 : vector<1x8x128xf32> to vector<8x128xf32>
    %cst = arith.constant 0.000000e+00 : f32
    %2 = vector.broadcast %cst : f32 to vector<8x128xf32>
    %c0_2 = arith.constant 0 : index
    %c0_3 = arith.constant 0 : index
    %c0_4 = arith.constant 0 : index
    %3 = vector.load %arg2[%c0_2, %c0_3, %c0_4] : memref<1x128x128xf32, #tpu.memory_space<vmem>>, vector<1x128x128xf32>
    %4 = vector.shape_cast %3 : vector<1x128x128xf32> to vector<128x128xf32>
    %cst_5 = arith.constant dense<0.000000e+00> : vector<8x128xf32>
    %5 = tpu.matmul %1, %4, %cst_5 {dimension_numbers = #tpu.dot_dimension_numbers<[1], [0], [0], [1], [0, 0, 1, 1], [], []>} : vector<8x128xf32>, vector<128x128xf32>, vector<8x128xf32> -> vector<8x128xf32>
    %cst_6 = arith.constant dense<0.000000e+00> : vector<8x8xf32>
    %6 = tpu.matmul %5, %1, %cst_6 {dimension_numbers = #tpu.dot_dimension_numbers<[1], [1], [0], [0], [0, 0, 1, 0], [], []>} : vector<8x128xf32>, vector<8x128xf32>, vector<8x8xf32> -> vector<8x8xf32>
    %cst_7 = arith.constant dense<0xFF800000> : vector<8xf32>
    %7 = vector.multi_reduction <maximumf>, %6, %cst_7 [1] : vector<8x8xf32> to vector<8xf32>
    %8 = vector.shape_cast %7 : vector<8xf32> to vector<8x1xf32>
    %9 = vector.broadcast %8 : vector<8x1xf32> to vector<8x8xf32>
    %10 = arith.subf %6, %9 : vector<8x8xf32>
    %11 = math.exp %10 : vector<8x8xf32>
    %cst_8 = arith.constant dense<0.000000e+00> : vector<8xf32>
    %12 = vector.multi_reduction <add>, %11, %cst_8 [1] : vector<8x8xf32> to vector<8xf32>
    %13 = vector.shape_cast %12 : vector<8xf32> to vector<8x1xf32>
    %14 = tpu.reciprocal %13 {approx = true} : vector<8x1xf32> -> vector<8x1xf32>
    %15 = vector.broadcast %14 : vector<8x1xf32> to vector<8x8xf32>
    %16 = arith.mulf %11, %15 : vector<8x8xf32>
    %cst_9 = arith.constant 9.99999993E-9 : f32
    %17 = vector.broadcast %cst_9 : f32 to vector<8x8xf32>
    %18 = arith.addf %16, %17 : vector<8x8xf32>
    %cst_10 = arith.constant dense<0.000000e+00> : vector<8x128xf32>
    %19 = tpu.matmul %18, %1, %cst_10 {dimension_numbers = #tpu.dot_dimension_numbers<[1], [0], [0], [1], [0, 0, 1, 1], [], []>} : vector<8x8xf32>, vector<8x128xf32>, vector<8x128xf32> -> vector<8x128xf32>
    %c0_11 = arith.constant 0 : index
    %c0_12 = arith.constant 0 : index
    %c0_13 = arith.constant 0 : index
    %20 = vector.load %arg3[%c0_11, %c0_12, %c0_13] : memref<1x128x128xf32, #tpu.memory_space<vmem>>, vector<1x128x128xf32>
    %21 = vector.shape_cast %20 : vector<1x128x128xf32> to vector<128x128xf32>
    %cst_14 = arith.constant dense<0.000000e+00> : vector<8x128xf32>
    %22 = tpu.matmul %19, %21, %cst_14 {dimension_numbers = #tpu.dot_dimension_numbers<[1], [0], [0], [1], [0, 0, 1, 1], [], []>} : vector<8x128xf32>, vector<128x128xf32>, vector<8x128xf32> -> vector<8x128xf32>
    %23 = arith.addf %2, %22 : vector<8x128xf32>
    %24 = arith.addf %1, %23 : vector<8x128xf32>
    %c0_15 = arith.constant 0 : index
    %c0_16 = arith.constant 0 : index
    %25 = vector.load %arg8[%c0_15, %c0_16] : memref<1x128xf32, #tpu.memory_space<vmem>>, vector<1x128xf32>
    %c0_17 = arith.constant 0 : index
    %c0_18 = arith.constant 0 : index
    %26 = vector.load %arg9[%c0_17, %c0_18] : memref<1x128xf32, #tpu.memory_space<vmem>>, vector<1x128xf32>
    %cst_19 = arith.constant dense<0.000000e+00> : vector<8xf32>
    %27 = vector.multi_reduction <add>, %24, %cst_19 [1] : vector<8x128xf32> to vector<8xf32>
    %28 = vector.shape_cast %27 : vector<8xf32> to vector<8x1xf32>
    %29 = arith.mulf %24, %24 : vector<8x128xf32>
    %cst_20 = arith.constant dense<0.000000e+00> : vector<8xf32>
    %30 = vector.multi_reduction <add>, %29, %cst_20 [1] : vector<8x128xf32> to vector<8xf32>
    %31 = vector.shape_cast %30 : vector<8xf32> to vector<8x1xf32>
    %cst_21 = arith.constant 3.125000e-02 : f32
    %32 = vector.broadcast %cst_21 : f32 to vector<8x1xf32>
    %33 = arith.mulf %28, %32 : vector<8x1xf32>
    %cst_22 = arith.constant 3.125000e-02 : f32
    %34 = vector.broadcast %cst_22 : f32 to vector<8x1xf32>
    %35 = arith.mulf %31, %34 : vector<8x1xf32>
    %36 = arith.mulf %33, %33 : vector<8x1xf32>
    %37 = arith.subf %35, %36 : vector<8x1xf32>
    %38 = vector.broadcast %33 : vector<8x1xf32> to vector<8x128xf32>
    %39 = arith.subf %24, %38 : vector<8x128xf32>
    %cst_23 = arith.constant 9.99999974E-6 : f32
    %40 = vector.broadcast %cst_23 : f32 to vector<8x1xf32>
    %41 = arith.addf %37, %40 : vector<8x1xf32>
    %42 = math.rsqrt %41 : vector<8x1xf32>
    %43 = vector.broadcast %42 : vector<8x1xf32> to vector<8x128xf32>
    %44 = arith.mulf %39, %43 : vector<8x128xf32>
    %45 = vector.broadcast %25 : vector<1x128xf32> to vector<8x128xf32>
    %46 = arith.mulf %44, %45 : vector<8x128xf32>
    %47 = vector.broadcast %26 : vector<1x128xf32> to vector<8x128xf32>
    %48 = arith.addf %46, %47 : vector<8x128xf32>
    %c0_24 = arith.constant 0 : index
    %c0_25 = arith.constant 0 : index
    %49 = vector.load %arg4[%c0_24, %c0_25] : memref<128x256xf32, #tpu.memory_space<vmem>>, vector<128x256xf32>
    %cst_26 = arith.constant dense<0.000000e+00> : vector<8x256xf32>
    %50 = tpu.matmul %48, %49, %cst_26 {dimension_numbers = #tpu.dot_dimension_numbers<[1], [0], [0], [1], [0, 0, 1, 1], [], []>} : vector<8x128xf32>, vector<128x256xf32>, vector<8x256xf32> -> vector<8x256xf32>
    %c0_27 = arith.constant 0 : index
    %c0_28 = arith.constant 0 : index
    %51 = vector.load %arg5[%c0_27, %c0_28] : memref<1x256xf32, #tpu.memory_space<vmem>>, vector<1x256xf32>
    %52 = vector.broadcast %51 : vector<1x256xf32> to vector<8x256xf32>
    %53 = arith.addf %50, %52 : vector<8x256xf32>
    %cst_29 = arith.constant 0.000000e+00 : f32
    %54 = vector.broadcast %cst_29 : f32 to vector<8x256xf32>
    %55 = arith.maximumf %53, %54 : vector<8x256xf32>
    %c0_30 = arith.constant 0 : index
    %c0_31 = arith.constant 0 : index
    %56 = vector.load %arg6[%c0_30, %c0_31] : memref<256x128xf32, #tpu.memory_space<vmem>>, vector<256x128xf32>
    %cst_32 = arith.constant dense<0.000000e+00> : vector<8x128xf32>
    %57 = tpu.matmul %55, %56, %cst_32 {dimension_numbers = #tpu.dot_dimension_numbers<[1], [0], [0], [1], [0, 0, 1, 1], [], []>} : vector<8x256xf32>, vector<256x128xf32>, vector<8x128xf32> -> vector<8x128xf32>
    %c0_33 = arith.constant 0 : index
    %c0_34 = arith.constant 0 : index
    %58 = vector.load %arg7[%c0_33, %c0_34] : memref<1x128xf32, #tpu.memory_space<vmem>>, vector<1x128xf32>
    %59 = vector.broadcast %58 : vector<1x128xf32> to vector<8x128xf32>
    %60 = arith.addf %57, %59 : vector<8x128xf32>
    %61 = arith.addf %48, %60 : vector<8x128xf32>
    %c0_35 = arith.constant 0 : index
    %c0_36 = arith.constant 0 : index
    %62 = vector.load %arg10[%c0_35, %c0_36] : memref<1x128xf32, #tpu.memory_space<vmem>>, vector<1x128xf32>
    %c0_37 = arith.constant 0 : index
    %c0_38 = arith.constant 0 : index
    %63 = vector.load %arg11[%c0_37, %c0_38] : memref<1x128xf32, #tpu.memory_space<vmem>>, vector<1x128xf32>
    %cst_39 = arith.constant dense<0.000000e+00> : vector<8xf32>
    %64 = vector.multi_reduction <add>, %61, %cst_39 [1] : vector<8x128xf32> to vector<8xf32>
    %65 = vector.shape_cast %64 : vector<8xf32> to vector<8x1xf32>
    %66 = arith.mulf %61, %61 : vector<8x128xf32>
    %cst_40 = arith.constant dense<0.000000e+00> : vector<8xf32>
    %67 = vector.multi_reduction <add>, %66, %cst_40 [1] : vector<8x128xf32> to vector<8xf32>
    %68 = vector.shape_cast %67 : vector<8xf32> to vector<8x1xf32>
    %cst_41 = arith.constant 3.125000e-02 : f32
    %69 = vector.broadcast %cst_41 : f32 to vector<8x1xf32>
    %70 = arith.mulf %65, %69 : vector<8x1xf32>
    %cst_42 = arith.constant 3.125000e-02 : f32
    %71 = vector.broadcast %cst_42 : f32 to vector<8x1xf32>
    %72 = arith.mulf %68, %71 : vector<8x1xf32>
    %73 = arith.mulf %70, %70 : vector<8x1xf32>
    %74 = arith.subf %72, %73 : vector<8x1xf32>
    %75 = vector.broadcast %70 : vector<8x1xf32> to vector<8x128xf32>
    %76 = arith.subf %61, %75 : vector<8x128xf32>
    %cst_43 = arith.constant 9.99999974E-6 : f32
    %77 = vector.broadcast %cst_43 : f32 to vector<8x1xf32>
    %78 = arith.addf %74, %77 : vector<8x1xf32>
    %79 = math.rsqrt %78 : vector<8x1xf32>
    %80 = vector.broadcast %79 : vector<8x1xf32> to vector<8x128xf32>
    %81 = arith.mulf %76, %80 : vector<8x128xf32>
    %82 = vector.broadcast %62 : vector<1x128xf32> to vector<8x128xf32>
    %83 = arith.mulf %81, %82 : vector<8x128xf32>
    %84 = vector.broadcast %63 : vector<1x128xf32> to vector<8x128xf32>
    %85 = arith.addf %83, %84 : vector<8x128xf32>
    %c0_44 = arith.constant 0 : index
    %c0_45 = arith.constant 0 : index
    %c0_46 = arith.constant 0 : index
    %86 = vector.load %arg12[%c0_44, %c0_45, %c0_46] : memref<1x8x128xf32, #tpu.memory_space<vmem>>, vector<1x8x128xf32>
    %87 = vector.shape_cast %86 : vector<1x8x128xf32> to vector<8x128xf32>
    %88 = vector.shape_cast %85 : vector<8x128xf32> to vector<1x8x128xf32>
    tpu.vector_store %arg12[%c0_44, %c0_45, %c0_46], %88 {strides = array<i32>} : memref<1x8x128xf32, #tpu.memory_space<vmem>>, vector<1x8x128xf32>,
    return
  }
  func.func @transform_0(%arg0: i32) -> (i32, i32, i32) {
    %c0_i32 = arith.constant 0 : i32
    %c0_i32_0 = arith.constant 0 : i32
    %c0_i32_1 = arith.constant 0 : i32
    return %arg0, %c0_i32, %c0_i32_0 : i32, i32, i32
  }
  func.func @transform_1(%arg0: i32) -> (i32, i32, i32) {
    %c0_i32 = arith.constant 0 : i32
    %c0_i32_0 = arith.constant 0 : i32
    %c0_i32_1 = arith.constant 0 : i32
    %c0_i32_2 = arith.constant 0 : i32
    return %c0_i32, %c0_i32_0, %c0_i32_1 : i32, i32, i32
  }
  func.func @transform_2(%arg0: i32) -> (i32, i32, i32) {
    %c0_i32 = arith.constant 0 : i32
    %c0_i32_0 = arith.constant 0 : i32
    %c0_i32_1 = arith.constant 0 : i32
    %c0_i32_2 = arith.constant 0 : i32
    return %c0_i32, %c0_i32_0, %c0_i32_1 : i32, i32, i32
  }
  func.func @transform_3(%arg0: i32) -> (i32, i32) {
    %c0_i32 = arith.constant 0 : i32
    %c0_i32_0 = arith.constant 0 : i32
    %c0_i32_1 = arith.constant 0 : i32
    return %c0_i32, %c0_i32_0 : i32, i32
  }
  func.func @transform_4(%arg0: i32) -> (i32, i32) {
    %c0_i32 = arith.constant 0 : i32
    %c0_i32_0 = arith.constant 0 : i32
    %c0_i32_1 = arith.constant 0 : i32
    return %c0_i32, %c0_i32_0 : i32, i32
  }
  func.func @transform_5(%arg0: i32) -> (i32, i32) {
    %c0_i32 = arith.constant 0 : i32
    %c0_i32_0 = arith.constant 0 : i32
    %c0_i32_1 = arith.constant 0 : i32
    return %c0_i32, %c0_i32_0 : i32, i32
  }
  func.func @transform_6(%arg0: i32) -> (i32, i32) {
    %c0_i32 = arith.constant 0 : i32
    %c0_i32_0 = arith.constant 0 : i32
    %c0_i32_1 = arith.constant 0 : i32
    return %c0_i32, %c0_i32_0 : i32, i32
  }
  func.func @transform_7(%arg0: i32) -> (i32, i32) {
    %c0_i32 = arith.constant 0 : i32
    %c0_i32_0 = arith.constant 0 : i32
    %c0_i32_1 = arith.constant 0 : i32
    return %c0_i32, %c0_i32_0 : i32, i32
  }
  func.func @transform_8(%arg0: i32) -> (i32, i32) {
    %c0_i32 = arith.constant 0 : i32
    %c0_i32_0 = arith.constant 0 : i32
    %c0_i32_1 = arith.constant 0 : i32
    return %c0_i32, %c0_i32_0 : i32, i32
  }
  func.func @transform_9(%arg0: i32) -> (i32, i32) {
    %c0_i32 = arith.constant 0 : i32
    %c0_i32_0 = arith.constant 0 : i32
    %c0_i32_1 = arith.constant 0 : i32
    return %c0_i32, %c0_i32_0 : i32, i32
  }
  func.func @transform_10(%arg0: i32) -> (i32, i32) {
    %c0_i32 = arith.constant 0 : i32
    %c0_i32_0 = arith.constant 0 : i32
    %c0_i32_1 = arith.constant 0 : i32
    return %c0_i32, %c0_i32_0 : i32, i32
  }
  func.func @transform_11(%arg0: i32) -> (i32, i32, i32) {
    %c0_i32 = arith.constant 0 : i32
    %c0_i32_0 = arith.constant 0 : i32
    %c0_i32_1 = arith.constant 0 : i32
    return %arg0, %c0_i32, %c0_i32_0 : i32, i32, i32
  }
}

</mosaic_0001>

<bundles_post_ra>
// kernel: transformer_block.1
= control target key start
LH: loop header
LB: loop body
LE: loop exit
PB: predicated region body
PF: predicated region fallthrough
CT: control target
= control target key end

     0   :  { %s1978_s0 = inlined_call_operand.vmem [shape: f32[4,8,128], index: 0, kind: input, shape index: {}]   ;;  %s1979_s1 = inlined_call_operand.vmem [shape: f32[1,128,128], index: 1, kind: input, shape index: {}]   ;;  %s1980_s2 = inlined_call_operand.vmem [shape: f32[1,128,128], index: 2, kind: input, shape index: {}]   ;;  %s1981_s3 = inlined_call_operand.vmem [shape: f32[128,256], index: 3, kind: input, shape index: {}]   ;;  %s1982_s4 = inlined_call_operand.vmem [shape: f32[1,256], index: 4, kind: input, shape index: {}]   ;;  %s1983_s5 = inlined_call_operand.vmem [shape: f32[256,128], index: 5, kind: input, shape index: {}]   ;;  %s1984_s6 = inlined_call_operand.vmem [shape: f32[1,128], index: 6, kind: input, shape index: {}]   ;;  %s1985_s7 = inlined_call_operand.vmem [shape: f32[1,128], index: 7, kind: input, shape index: {}]   ;;  %s1986_s8 = inlined_call_operand.vmem [shape: f32[1,128], index: 8, kind: input, shape index: {}]   ;;  %s1987_s9 = inlined_call_operand.vmem [shape: f32[1,128], index: 9, kind: input, shape index: {}]   ;;  %s1988_s10 = inlined_call_operand.vmem [shape: f32[1,128], index: 10, kind: input, shape index: {}]   ;;  %s1989_s11 = inlined_call_operand.hbm [shape: f32[4,8,128], index: 11, kind: output, shape index: {}]  }
   0x1   :  { %1990 = sst [smem:[#allocation6_spill]] %s1978_s0 }
   0x2   :  { %16 = vsyncpa [#allocation3], 0 }
   0x3   :  { %18 = vsyncpa [#allocation3 + $0x1], 0  ;;  %s1530_s17 = smov 0   ;;  %s1532_s18 = smov 0  }
   0x4   :  { %s1534_s19 = smov 0   ;;  %s1536_s20 = smov 0  }
   0x5 LB: > { %s1551_s21 = sadd.s32 4294967295, %s1464_s20   ;;  %s1071_s22 = sadd.s32 4294967294, %s1464_s20   ;;  %s1464_s20 = sphi %s1536_s20, %s1999_s20   ;;  %s1460_s19 = sphi %s1534_s19, %s1998_s19   ;;  %s1456_s18 = sphi %s1532_s18, %s1997_s18   ;;  %s1452_s17 = sphi %s1530_s17, %s1996_s17  }
   0x6   : > { %s1555_s23 = sadd.s32 1, %s1464_s20   ;;  %s267_s24 = sadd.s32 1, %s1460_s19 }
   0x7   : > { %s264_s25 = ssub.s32 %s1464_s20, %s1555_s23  ;;  %p277_p0 = scmp.ne.s32.totalorder %s1460_s19, %s1456_s18 }
   0x8   : > { %p265_p1 = scmp.eq.s32.totalorder %s264_s25, 0  ;;  %p278_p2 = scmp.eq.s32.totalorder %s1551_s21, 3 }
   0x9   : > { %p283_p3 = scmp.ne.s32.totalorder %s1456_s18, %s1452_s17  ;;  %p284_p4 = scmp.eq.s32.totalorder %s1071_s22, 3 }
   0xa   : > { %s1566_s26 = scalar_select %p265_p1, %s1460_s19, %s267_s24  }
   0xb   : > { %p1568_p5 = por %p278_p2, %p277_p0  ;;  %p1572_p6 = por %p284_p4, %p283_p3 }
   0xc   : > { %1991 = sst [smem:[#allocation5_spill]] %s1566_s26  ;;  %p1074_p7 = scmp.ge.s32.totalorder %s1464_s20, 1 }
   0xd   : > { %p339_p8 = scmp.lt.s32.totalorder %s1464_s20, 5 }
   0xf   : > { %p340_p9 = pnand %p1074_p7, %p339_p8 }
  0x10   : > { %v383_v0 = vld [vmem:[%s1979_s1] sm:$0xff] (!%p340_p9)  ;;  %v384_v1 = vld [vmem:[%s1979_s1 + $0x8] sm:$0xff] (!%p340_p9)  ;;  %v385_v2 = vld [vmem:[%s1979_s1 + $0x10] sm:$0xff] (!%p340_p9)  ;;  %v1466_v3 = vmov (!%p340_p9), 0.0|0.0   ;;  %vm1467_vm0 = vmmov (!%p340_p9), 0   ;;  %v1468_v6 = vmov (!%p340_p9), 0.0  }
  0x11   : > { %343 = sbr.rel (%p340_p9) target bundleno = 2003 (0x7d3), region = 64  ;;  %1240 = vmatprep.subr.bf16.mxu0 (!%p340_p9), %v1466_v3  ;;  %v1241_v4 = vpack.c.bf16 (!%p340_p9), %v384_v1, %v383_v0  ;;  %v386_v5 = vld [vmem:[%s1979_s1 + $0x18] sm:$0xff] (!%p340_p9)  ;;  %1192 = vmatprep.mubr.msk.f32.mxu0 (!%p340_p9), %vm1467_vm0, %v1468_v6  ;;  %p378_p10 = scmp.lt.s32.totalorder (!%p340_p9), %s1551_s21, 3  ;;  %v387_v8 = vld [vmem:[%s1979_s1 + $0x20] sm:$0xff] (!%p340_p9)  ;;  %v388_v9 = vld [vmem:[%s1979_s1 + $0x28] sm:$0xff] (!%p340_p9)  ;;  %vm539_vm1 = vcmask (!%p340_p9), 64512  }
  0x12   : > { %1200 = vmatprep.subr.mxu1 (!%p340_p9), %v1468_v6  ;;  %1202 = vmatprep.mubr.msk.f32.mxu1 (!%p340_p9), %vm1467_vm0, %v1468_v6  ;;  %v1244_v7 = vpack.c.bf16 (!%p340_p9), %v386_v5, %v385_v2  ;;  %s1994_s0 = sld [smem:[#allocation6_spill]] (!%p340_p9)  ;;  %v1247_v10 = vpack.c.bf16 (!%p340_p9), %v388_v9, %v387_v8  ;;  %v389_v12 = vld [vmem:[%s1979_s1 + $0x30] sm:$0xff] (!%p340_p9)  ;;  %v390_v13 = vld [vmem:[%s1979_s1 + $0x38] sm:$0xff] (!%p340_p9)  ;;  %v391_v15 = vld [vmem:[%s1979_s1 + $0x40] sm:$0xff] (!%p340_p9)  ;;  %s375_s22 = sand.u32 (!%p340_p9), 1, %s1456_s18  }
  0x13   : > { %1242 = vmatpush3.bf16.msra.mxu0 (!%p340_p9), %v1241_v4  ;;  %v1250_v14 = vpack.c.bf16 (!%p340_p9), %v390_v13, %v389_v12  ;;  %v392_v16 = vld [vmem:[%s1979_s1 + $0x48] sm:$0xff] (!%p340_p9)  ;;  %v393_v18 = vld [vmem:[%s1979_s1 + $0x50] sm:$0xff] (!%p340_p9)  ;;  %v394_v19 = vld [vmem:[%s1979_s1 + $0x58] sm:$0xff] (!%p340_p9)  ;;  %s1075_s25 = sshll.u32 (!%p340_p9), %s375_s22, 3  ;;  %s999_s29 = scalar_lea.sflag (!%p340_p9), [#allocation3], %s375_s22 }
  0x14   : > { %1243 = vmatprep.subr.bf16.mxu0 (!%p340_p9), %v1466_v3  ;;  %v1253_v17 = vpack.c.bf16 (!%p340_p9), %v392_v16, %v391_v15  ;;  %v1256_v20 = vpack.c.bf16 (!%p340_p9), %v394_v19, %v393_v18  ;;  %v395_v21 = vld [vmem:[%s1979_s1 + $0x60] sm:$0xff] (!%p340_p9)  ;;  %v396_v22 = vld [vmem:[%s1979_s1 + $0x68] sm:$0xff] (!%p340_p9)  ;;  %v397_v24 = vld [vmem:[%s1979_s1 + $0x70] sm:$0xff] (!%p340_p9)  ;;  %s377_s26 = scalar_lea.vmem (!%p340_p9), [#allocation2], %s1075_s25 }
  0x15   : > { %v1259_v23 = vpack.c.bf16 (!%p340_p9), %v396_v22, %v395_v21  ;;  %v398_v25 = vld [vmem:[%s1979_s1 + $0x78] sm:$0xff] (!%p340_p9)  ;;  %v625_v38 = vld [vmem:[%s1980_s2] sm:$0xff] (!%p340_p9)  ;;  %v626_v39 = vld [vmem:[%s1980_s2 + $0x8] sm:$0xff] (!%p340_p9)  ;;  %s1012_s14 = sshll.u32 (!%p340_p9), %s377_s26, 4  ;;  %s1938_s14 = int_to_ptr.vmem [resolvable:$true] %s1012_s14 }
  0x16   : > { %v1262_v26 = vpack.c.bf16 (!%p340_p9), %v398_v25, %v397_v24  ;;  %v1265_v42 = vpack.c.bf16 (!%p340_p9), %v626_v39, %v625_v38  ;;  %v627_v44 = vld [vmem:[%s1980_s2 + $0x10] sm:$0xff] (!%p340_p9)  ;;  %v628_v45 = vld [vmem:[%s1980_s2 + $0x18] sm:$0xff] (!%p340_p9)  ;;  %v629_v47 = vld [vmem:[%s1980_s2 + $0x20] sm:$0xff] (!%p340_p9) }
  0x17   : > { %1245 = vmatpush3.bf16.msra.mxu0 (!%p340_p9), %v1244_v7  ;;  %v1268_v46 = vpack.c.bf16 (!%p340_p9), %v628_v45, %v627_v44  ;;  %v630_v48 = vld [vmem:[%s1980_s2 + $0x28] sm:$0xff] (!%p340_p9)  ;;  %v631_v50 = vld [vmem:[%s1980_s2 + $0x30] sm:$0xff] (!%p340_p9)  ;;  %v632_v51 = vld [vmem:[%s1980_s2 + $0x38] sm:$0xff] (!%p340_p9) }
  0x18   : > { %s379_s24 = scalar_select %p378_p10, %s1551_s21, 3  ;;  %1246 = vmatprep.subr.bf16.mxu0 %v1466_v3  ;;  %v1271_v49 = vpack.c.bf16 %v630_v48, %v629_v47  ;;  %v1274_v52 = vpack.c.bf16 %v632_v51, %v631_v50  ;;  %v633_v53 = vld [vmem:[%s1980_s2 + $0x40] sm:$0xff]  ;;  %v634_v54 = vld [vmem:[%s1980_s2 + $0x48] sm:$0xff]  ;;  %v635_v56 = vld [vmem:[%s1980_s2 + $0x50] sm:$0xff] }
  0x19   : > { %v1277_v55 = vpack.c.bf16 %v634_v54, %v633_v53  ;;  %v636_v57 = vld [vmem:[%s1980_s2 + $0x58] sm:$0xff]  ;;  %v637_v59 = vld [vmem:[%s1980_s2 + $0x60] sm:$0xff]  ;;  %v638_v60 = vld [vmem:[%s1980_s2 + $0x68] sm:$0xff] }
  0x1a   : > { %s1076_s13 = sshll.u32 %s379_s24, 3  ;;  %v1280_v58 = vpack.c.bf16 %v636_v57, %v635_v56  ;;  %v1283_v61 = vpack.c.bf16 %v638_v60, %v637_v59  ;;  %v639_v62 = vld [vmem:[%s1980_s2 + $0x70] sm:$0xff]  ;;  %v640_v63 = vld [vmem:[%s1980_s2 + $0x78] sm:$0xff]  ;;  %v742_v4 = vld [vmem:[%s1981_s3 + $0x8] sm:$0xff]  ;;  %s1402_s24 = scalar_lea.vmem %s1938_s14, 128 }
  0x1b   : > { %s381_s16 = scalar_lea.vmem %s1994_s0, %s1076_s13  ;;  %1248 = vmatpush3.bf16.msra.mxu0 %v1247_v10  ;;  %v1286_v0 = vpack.c.bf16 %v640_v63, %v639_v62  ;;  %v744_v5 = vld [vmem:[%s1981_s3 + $0x18] sm:$0xff]  ;;  %v746_v8 = vld [vmem:[%s1981_s3 + $0x28] sm:$0xff]  ;;  %v747_v18 = vld [vmem:[%s1981_s3 + $0x30] sm:$0xff]  ;;  %s1084_s13 = sshll.u32 %s1551_s21, 7 }
  0x1c   : > { %v1608_v11 = vld [vmem:[%s381_s16] sm:$0xff]  ;;  %1249 = vmatprep.subr.bf16.mxu0 %v1466_v3  ;;  %v1288_v7 = vpack.c.bf16 %v744_v5, %v742_v4  ;;  %v748_v9 = vld [vmem:[%s1981_s3 + $0x38] sm:$0xff]  ;;  %v754_v25 = vld [vmem:[%s1981_s3 + $0x68] sm:$0xff]  ;;  %s1936_s0 = scalar_lea.hbm %s1989_s11, %s1084_s13  ;;  %p1403_p11 = scmp.ne.s32.totalorder %s1938_s14, %s1402_s24 }
  0x1d   : > { %1201 = vmatpush3.msra.mxu1 %v1608_v11  ;;  %v1292_v12 = vpack.c.bf16 %v748_v9, %v746_v8  ;;  %v749_v22 = vld [vmem:[%s1981_s3 + $0x40] sm:$0xff]  ;;  %v764_v38 = vld [vmem:[%s1981_s3 + $0xb8] sm:$0xff]  ;;  %v767_v47 = vld [vmem:[%s1981_s3 + $0xd0] sm:$0xff]  ;;  %s1469_s21 = smov [#allocation2]  }
  0x1e   : > { %1264 = vmatprep.subr.bf16.mxu1 %v1466_v3  ;;  %v761_v39 = vld [vmem:[%s1981_s3 + $0xa0] sm:$0xff]  ;;  %v770_v48 = vld [vmem:[%s1981_s3 + $0xe8] sm:$0xff]  ;;  %v771_v53 = vld [vmem:[%s1981_s3 + $0xf0] sm:$0xff]  ;;  %p1404_p12 = pnand %p1403_p11, %p1568_p5  ;;  %s1406_s25 = sshll.u32 %s1469_s21, 4  ;;  %s1407_s25 = int_to_ptr.vmem [resolvable:$false] %s1406_s25 }
  0x1f   : > { %1251 = vmatpush3.bf16.msra.mxu0 %v1250_v14  ;;  %v875_v56 = vld [vmem:[%s1983_s5 + $0x88] sm:$0xff]  ;;  %v858_v57 = vld [vmem:[%s1983_s5] sm:$0xff]  ;;  %v876_v60 = vld [vmem:[%s1983_s5 + $0x90] sm:$0xff]  ;;  %s1408_s30 = scalar_lea.vmem %s1407_s25, 256  ;;  %p1409_p0 = scmp.lt.s32.totalorder %s1938_s14, %s1407_s25 }
  0x20   : > { %1252 = vmatprep.subr.bf16.mxu0 %v1466_v3  ;;  %v859_v59 = vld [vmem:[%s1983_s5 + $0x8] sm:$0xff]  ;;  %v880_v8 = vld [vmem:[%s1983_s5 + $0xb0] sm:$0xff]  ;;  %v881_v9 = vld [vmem:[%s1983_s5 + $0xb8] sm:$0xff]  ;;  %p1405_p13 = pneg %p1404_p12  ;;  %p1410_p1 = scmp.lt.s32.totalorder %s1408_s30, %s1402_s24 }
  0x21   : > { %v1322_v62 = vpack.c.bf16 %v859_v59, %v858_v57  ;;  %v879_v4 = vld [vmem:[%s1983_s5 + $0xa8] sm:$0xff] }
  0x22   : > { %p1411_p2 = por %p1410_p1, %p1409_p0 }
  0x23   : > { %1254 = vmatpush3.bf16.msra.mxu0 %v1253_v17  ;;  %v745_v17 = vld [vmem:[%s1981_s3 + $0x20] sm:$0xff] }
  0x24   : > { %1255 = vmatprep.subr.bf16.mxu0 %v1466_v3  ;;  %v1294_v19 = vpack.c.bf16 %v747_v18, %v745_v17  ;;  %v883_v17 = vld [vmem:[%s1983_s5 + $0xc8] sm:$0xff]  ;;  %p1412_p3 = pnand %p1411_p2, %p1405_p13 }
  0x27   : > { %1257 = vmatpush3.bf16.msra.mxu0 %v1256_v20  ;;  %v752_v20 = vld [vmem:[%s1981_s3 + $0x58] sm:$0xff] }
  0x28   : > { %1258 = vmatprep.subr.bf16.mxu0 %v1466_v3 }
  0x2b   : > { %1260 = vmatpush3.bf16.msra.mxu0 %v1259_v23  ;;  %v751_v23 = vld [vmem:[%s1981_s3 + $0x50] sm:$0xff] }
  0x2c   : > { %1261 = vmatprep.subr.bf16.mxu0 %v1466_v3  ;;  %v1298_v24 = vpack.c.bf16 %v751_v23, %v749_v22  ;;  %v885_v22 = vld [vmem:[%s1983_s5 + $0xd8] sm:$0xff] }
  0x2f   : > { %1263 = vmatpush3.bf16.msra.mxu0 %v1262_v26  ;;  %v756_v26 = vld [vmem:[%s1981_s3 + $0x78] sm:$0xff] }
  0x30   : > { %1195 = vmatprep.subr.mxu0 %v1468_v6 }
  0x32   : > { %1193 = vmatmul.mubr.f32.vlgmr.msra.gmra.mrb[0].mxu0 %v1608_v11 }
  0x33   : > { %1197 = vmatprep.mubr.msk.f32.mxu0 %vm1467_vm0, %v1468_v6 }
  0x38   : > { %1196 = vmatpush3.xpose.msra.mxu0 %v1608_v11 }
  0x39   : > { %1289 = vmatprep.subr.bf16.mxu0 %v1288_v7  ;;  %v862_v7 = vld [vmem:[%s1983_s5 + $0x20] sm:$0xff] }
 0x105   : > { %v465_v27 = vpop.f32.mrb[0].mxu0 }
 0x106   : > { %v1194_v28 = vpop.f32.mrb[1].mxu0  ;;  %1198 = vmatmul.mubr.f32.vlgmr.msra.gmra.mrb[2].mxu0 %v465_v27  ;;  %v1300_v27 = vpack.c.bf16 %v756_v26, %v754_v25  ;;  %v868_v25 = vld [vmem:[%s1983_s5 + $0x50] sm:$0xff]  ;;  %v869_v26 = vld [vmem:[%s1983_s5 + $0x58] sm:$0xff] }
 0x107   : > { %849 = vmatprep.mubr.f32.mxu0 %v1468_v6  ;;  %v753_v28 = vld [vmem:[%s1981_s3 + $0x60] sm:$0xff] }
 0x1d9   : > { %v535_v29 = vpop.f32.mrb[2].mxu0 }
 0x1da   : > { %v1199_v30 = vpop.f32.mrb[3].mxu0  ;;  %v540_v31 = vsel %vm539_vm1, %v535_v29, -inf }
 0x1db   : > { %541 = vmax.xlane.f32.xlu0 %v540_v31  ;;  %v758_v31 = vld [vmem:[%s1981_s3 + $0x88] sm:$0xff] }
 0x268   : > { %v542_v32 = vpop.xlane.xlu0 %541 }
 0x269   : > { %v543_v33 = vsub.f32 %v535_v29, %v542_v32  ;;  %v755_v29 = vld [vmem:[%s1981_s3 + $0x70] sm:$0xff]  ;;  %v760_v32 = vld [vmem:[%s1981_s3 + $0x98] sm:$0xff] }
 0x26a   : > { %v1302_v30 = vpack.c.bf16 %v755_v29, %v753_v28  ;;  %v887_v28 = vld [vmem:[%s1983_s5 + $0xe8] sm:$0xff]  ;;  %v1342_v29 = vpack.c.bf16 %v869_v26, %v868_v25 }
 0x26b   : > { %v544_v34 = vmul.f32 1.442695, %v543_v33  ;;  %v1304_v33 = vpack.c.bf16 %v760_v32, %v758_v31 }
 0x26d   : > { %1394 = vpow2.f32 %v544_v34  ;;  %v757_v34 = vld [vmem:[%s1981_s3 + $0x80] sm:$0xff] }
 0x277   : > { %v1395_v35 = vpop.eup %1394 }
 0x278   : > { %v546_v36 = vsel %vm539_vm1, %v1395_v35, 0.0 }
 0x279   : > { %547 = vadd.xlane.f32.xlu0 %v546_v36 }
 0x306   : > { %v548_v37 = vpop.xlane.xlu0 %547 }
 0x307   : > { %1396 = vrcp.f32 %v548_v37  ;;  %v762_v37 = vld [vmem:[%s1981_s3 + $0xa8] sm:$0xff] }
 0x311   : > { %v1397_v40 = vpop.eup %1396 }
 0x312   : > { %v550_v41 = vmul.f32 %v1397_v40, %v1395_v35  ;;  %v759_v35 = vld [vmem:[%s1981_s3 + $0x90] sm:$0xff]  ;;  %v1308_v40 = vpack.c.bf16 %v764_v38, %v762_v37 }
 0x313   : > { %v1306_v36 = vpack.c.bf16 %v759_v35, %v757_v34 }
 0x314   : > { %v551_v43 = vadd.f32 1e-08, %v550_v41  ;;  %v763_v41 = vld [vmem:[%s1981_s3 + $0xb0] sm:$0xff] }
 0x315   : > { %v1310_v44 = vpack.c.bf16 %v763_v41, %v761_v39 }
 0x316   : > { %1203 = vmatmul.mubr.msk.f32.vlgmr.msra.gmra.mrb[0].mxu1 %vm539_vm1, %v551_v43  ;;  %v768_v43 = vld [vmem:[%s1981_s3 + $0xd8] sm:$0xff] }
 0x317   : > { %1266 = vmatpush3.bf16.msra.mxu1 %v1265_v42  ;;  %1237 = vmatprep.mubr.msk.f32.mxu1 %vm1467_vm0, %v1468_v6  ;;  %v741_v6 = vld [vmem:[%s1981_s3] sm:$0xff]  ;;  %v766_v42 = vld [vmem:[%s1981_s3 + $0xc8] sm:$0xff] }
 0x318   : > { %1267 = vmatprep.subr.bf16.mxu1 %v1466_v3  ;;  %v1312_v45 = vpack.c.bf16 %v768_v43, %v766_v42  ;;  %v1079_v42 = vld [vmem:[%s1986_s8] ss:$0 sm:$0xff] }
 0x31b   : > { %1269 = vmatpush3.bf16.msra.mxu1 %v1268_v46  ;;  %v765_v46 = vld [vmem:[%s1981_s3 + $0xc0] sm:$0xff] }
 0x31c   : > { %1270 = vmatprep.subr.bf16.mxu1 %v1466_v3  ;;  %v1314_v50 = vpack.c.bf16 %v767_v47, %v765_v46  ;;  %v888_v47 = vld [vmem:[%s1983_s5 + $0xf0] sm:$0xff] }
 0x31f   : > { %1272 = vmatpush3.bf16.msra.mxu1 %v1271_v49  ;;  %v772_v49 = vld [vmem:[%s1981_s3 + $0xf8] sm:$0xff] }
 0x320   : > { %1273 = vmatprep.subr.bf16.mxu1 %v1466_v3  ;;  %v1316_v51 = vpack.c.bf16 %v772_v49, %v770_v48  ;;  %v889_v48 = vld [vmem:[%s1983_s5 + $0xf8] sm:$0xff] }
 0x321   : > { %v1348_v49 = vpack.c.bf16 %v889_v48, %v888_v47 }
 0x323   : > { %1275 = vmatpush3.bf16.msra.mxu1 %v1274_v52  ;;  %v769_v52 = vld [vmem:[%s1981_s3 + $0xe0] sm:$0xff] }
 0x324   : > { %1276 = vmatprep.subr.bf16.mxu1 %v1466_v3  ;;  %v1318_v54 = vpack.c.bf16 %v771_v53, %v769_v52  ;;  %v775_v53 = vlaneseq }
 0x327   : > { %1278 = vmatpush3.bf16.msra.mxu1 %v1277_v55  ;;  %v874_v55 = vld [vmem:[%s1983_s5 + $0x80] sm:$0xff] }
 0x328   : > { %1279 = vmatprep.subr.bf16.mxu1 %v1466_v3 }
 0x32b   : > { %1281 = vmatpush3.bf16.msra.mxu1 %v1280_v58  ;;  %v1320_v58 = vpack.c.bf16 %v875_v56, %v874_v55  ;;  %v773_v56 = vld [vmem:[%s1982_s4] sm:$0x3] }
 0x32c   : > { %1282 = vmatprep.subr.bf16.mxu1 %v1466_v3 }
 0x32f   : > { %1284 = vmatpush3.bf16.msra.mxu1 %v1283_v61  ;;  %v877_v61 = vld [vmem:[%s1983_s5 + $0x98] sm:$0xff] }
 0x330   : > { %1285 = vmatprep.subr.bf16.mxu1 %v1466_v3  ;;  %v743_v3 = vld [vmem:[%s1981_s3 + $0x10] sm:$0xff]  ;;  %v1324_v63 = vpack.c.bf16 %v877_v61, %v876_v60 }
 0x331   : > { %v1290_v10 = vpack.c.bf16 %v743_v3, %v741_v6  ;;  %v863_v3 = vld [vmem:[%s1983_s5 + $0x28] sm:$0xff] }
 0x333   : > { %1287 = vmatpush3.bf16.msra.mxu1 %v1286_v0  ;;  %1291 = vmatpush1.bf16.msra.mxu0 %v1290_v10  ;;  %v860_v0 = vld [vmem:[%s1983_s5 + $0x10] sm:$0xff]  ;;  %v1330_v10 = vpack.c.bf16 %v863_v3, %v862_v7 }
 0x334   : > { %1293 = vmatprep.subr.bf16.mxu0 %v1292_v12  ;;  %1321 = vmatprep.subr.bf16.mxu1 %v1320_v58  ;;  %v1332_v12 = vpack.c.bf16 %v881_v9, %v880_v8 }
 0x337   : > { %1295 = vmatpush1.bf16.msra.mxu0 %v1294_v19 }
 0x3e9   : > { %v621_v1 = vpop.f32.mrb[0].mxu1 }
 0x3ea   : > { %v1204_v2 = vpop.f32.mrb[1].mxu1  ;;  %1238 = vmatmul.mubr.f32.vlgmr.msra.gmra.mrb[2].mxu1 %v621_v1  ;;  %v861_v1 = vld [vmem:[%s1983_s5 + $0x18] sm:$0xff] }
 0x3eb   : > { %v878_v2 = vld [vmem:[%s1983_s5 + $0xa0] sm:$0xff]  ;;  %1323 = vmatpush3.bf16.msra.mxu1 %v1322_v62  ;;  %v1326_v5 = vpack.c.bf16 %v861_v1, %v860_v0 }
 0x3ec   : > { %1325 = vmatprep.subr.bf16.mxu1 %v1324_v63  ;;  %v1328_v6 = vpack.c.bf16 %v879_v4, %v878_v2  ;;  %v1080_v4 = vld [vmem:[%s1984_s6] ss:$0 sm:$0xff] }
 0x3ef   : > { %1327 = vmatpush3.bf16.msra.mxu1 %v1326_v5 }
 0x3f0   : > { %1329 = vmatprep.subr.bf16.mxu1 %v1328_v6 }
 0x3f3   : > { %1331 = vmatpush3.bf16.msra.mxu1 %v1330_v10 }
 0x3f4   : > { %1333 = vmatprep.subr.bf16.mxu1 %v1332_v12 }
 0x4bd   : > { %v707_v13 = vpop.f32.mrb[2].mxu1 }
 0x4be   : > { %v1733_v14 = vadd.f32 %v707_v13, %v1608_v11  ;;  %v1239_v15 = vpop.f32.mrb[3].mxu1  ;;  %v750_v11 = vld [vmem:[%s1981_s3 + $0x48] sm:$0xff]  ;;  %v864_v13 = vld [vmem:[%s1983_s5 + $0x30] sm:$0xff] }
 0x4bf   : > { %v1296_v21 = vpack.c.bf16 %v752_v20, %v750_v11  ;;  %v865_v15 = vld [vmem:[%s1983_s5 + $0x38] sm:$0xff]  ;;  %v866_v11 = vld [vmem:[%s1983_s5 + $0x40] sm:$0xff]  ;;  %v867_v20 = vld [vmem:[%s1983_s5 + $0x48] sm:$0xff] }
 0x4c0   : > { %714 = vadd.xlane.f32.xlu1 %v1733_v14  ;;  %v716_v16 = vmul.f32 %v1733_v14, %v1733_v14  ;;  %v1334_v18 = vpack.c.bf16 %v865_v15, %v864_v13  ;;  %v1338_v23 = vpack.c.bf16 %v867_v20, %v866_v11  ;;  %v1081_v11 = vld [vmem:[%s1987_s9] ss:$0 sm:$0xff] }
 0x4c1   : > { %1297 = vmatprep.subr.bf16.mxu0 %v1296_v21  ;;  %v884_v21 = vld [vmem:[%s1983_s5 + $0xd0] sm:$0xff] }
 0x4c2   : > { %1299 = vmatpush1.bf16.msra.mxu0 %v1298_v24  ;;  %1335 = vmatpush3.bf16.msra.mxu1 %v1334_v18  ;;  %v1340_v24 = vpack.c.bf16 %v885_v22, %v884_v21  ;;  %v1082_v21 = vld [vmem:[%s1988_s10] ss:$0 sm:$0xff] }
 0x4c3   : > { %1301 = vmatprep.subr.bf16.mxu0 %v1300_v27  ;;  %v886_v27 = vld [vmem:[%s1983_s5 + $0xe0] sm:$0xff] }
 0x4c4   : > { %717 = vadd.xlane.f32.xlu1 %v716_v16  ;;  %v882_v16 = vld [vmem:[%s1983_s5 + $0xc0] sm:$0xff] }
 0x4c5   : > { %v1336_v19 = vpack.c.bf16 %v883_v17, %v882_v16 }
 0x4c6   : > { %1303 = vmatpush1.bf16.msra.mxu0 %v1302_v30  ;;  %v1344_v30 = vpack.c.bf16 %v887_v28, %v886_v27 }
 0x4c7   : > { %1305 = vmatprep.subr.bf16.mxu0 %v1304_v33  ;;  %1337 = vmatprep.subr.bf16.mxu1 %v1336_v19 }
 0x4c8   : > { %1339 = vmatpush3.bf16.msra.mxu1 %v1338_v23 }
 0x4c9   : > { %1341 = vmatprep.subr.bf16.mxu1 %v1340_v24 }
 0x4ca   : > { %1307 = vmatpush1.bf16.msra.mxu0 %v1306_v36 }
 0x4cb   : > { %1309 = vmatprep.subr.bf16.mxu0 %v1308_v40  ;;  %v1078_v40 = vld [vmem:[%s1985_s7] ss:$0 sm:$0xff] }
 0x4cc   : > { %1343 = vmatpush3.bf16.msra.mxu1 %v1342_v29 }
 0x4cd   : > { %1345 = vmatprep.subr.bf16.mxu1 %v1344_v30 }
 0x4ce   : > { %1311 = vmatpush1.bf16.msra.mxu0 %v1310_v44 }
 0x4cf   : > { %1313 = vmatprep.subr.bf16.mxu0 %v1312_v45  ;;  %v870_v45 = vld [vmem:[%s1983_s5 + $0x60] sm:$0xff] }
 0x4d2   : > { %1315 = vmatpush1.bf16.msra.mxu0 %v1314_v50  ;;  %v872_v50 = vld [vmem:[%s1983_s5 + $0x70] sm:$0xff] }
 0x4d3   : > { %1317 = vmatprep.subr.bf16.mxu0 %v1316_v51  ;;  %v873_v51 = vld [vmem:[%s1983_s5 + $0x78] sm:$0xff] }
 0x4d4   : > { %v1350_v52 = vpack.c.bf16 %v873_v51, %v872_v50 }
 0x4d6   : > { %1319 = vmatpush1.bf16.msra.mxu0 %v1318_v54  ;;  %v776_v54 = vshrl.u32 %v775_v53, 7 }
 0x4d8   : > { %v777_v55 = vsub.s32 0, %v776_v54  ;;  %v781_v57 = vsub.s32 1, %v776_v54 }
 0x4da   : > { %v778_v58 = vrot.slane %v773_v56, %v777_v55  ;;  %v782_v59 = vrot.slane %v773_v56, %v781_v57 }
 0x54d   : > { %v715_v31 = vpop.xlane.xlu1 %714 }
 0x54e   : > { %v719_v32 = vmul.f32 0.03125, %v715_v31 }
 0x550   : > { %v721_v34 = vmul.f32 %v719_v32, %v719_v32  ;;  %v723_v38 = vsub.f32 %v1733_v14, %v719_v32  ;;  %v871_v14 = vld [vmem:[%s1983_s5 + $0x68] sm:$0xff] }
 0x551   : > { %v718_v33 = vpop.xlane.xlu1 %717  ;;  %v1346_v46 = vpack.c.bf16 %v871_v14, %v870_v45 }
 0x552   : > { %v720_v35 = vmul.f32 0.03125, %v718_v33 }
 0x553   : > { %1347 = vmatpush3.bf16.msra.mxu1 %v1346_v46 }
 0x554   : > { %v722_v36 = vsub.f32 %v720_v35, %v721_v34  ;;  %1349 = vmatprep.subr.bf16.mxu1 %v1348_v49 }
 0x556   : > { %v724_v37 = vadd.f32 1e-05, %v722_v36 }
 0x557   : > { %1351 = vmatpush3.bf16.msra.mxu1 %v1350_v52 }
 0x558   : > { %1398 = vrsqrt.f32 %v724_v37 }
 0x562   : > { %v1399_v39 = vpop.eup %1398 }
 0x563   : > { %v726_v41 = vmul.f32 %v1399_v39, %v723_v38 }
 0x565   : > { %v733_v43 = vmul.f32 %v1078_v40, %v726_v41 }
 0x567   : > { %v740_v44 = vadd.f32 %v1079_v42, %v733_v43 }
 0x569   : > { %850 = vmatmul.mubr.f32.vlgmr.msra.gmra.mrb[4].mxu0 %v740_v44 }
 0x63c   : > { %v851_v60 = vpop.f32.mrb[4].mxu0 }
 0x63d   : > { %v852_v61 = vadd.f32 %v851_v60, %v778_v58  ;;  %v853_v62 = vpop.f32.mrb[5].mxu0 }
 0x63e   : > { %v854_v63 = vadd.f32 %v853_v62, %v782_v59 }
 0x63f   : > { %v856_v1 = vmax.f32 %v852_v61, 0.0 }
 0x640   : > { %v857_v0 = vmax.f32 %v854_v63, 0.0 }
 0x642   : > { %961 = vmatprep.mubr.f32.mxu1 %v857_v0 }
 0x643   : > { %962 = vmatmul.mubr.f32.vlgmr.msra.gmra.mrb[4].mxu1 %v856_v1 }
 0x716   : > { %v1157_v2 = vpop.f32.mrb[4].mxu1 }
 0x717   : > { %v1158_v5 = vpop.f32.mrb[5].mxu1 }
 0x718   : > { %v1159_v6 = vadd.f32 %v1158_v5, %v1157_v2 }
 0x71a   : > { %v964_v7 = vadd.f32 %v1159_v6, %v1080_v4 }
 0x71c   : > { %v967_v3 = vadd.f32 %v964_v7, %v740_v44 }
 0x71e   : > { %970 = vadd.xlane.f32.xlu0 %v967_v3  ;;  %v972_v8 = vmul.f32 %v967_v3, %v967_v3 }
 0x720   : > { %973 = vadd.xlane.f32.xlu1 %v972_v8 }
 0x7ab   : > { %v971_v9 = vpop.xlane.xlu0 %970 }
 0x7ac   : > { %v975_v10 = vmul.f32 0.03125, %v971_v9 }
 0x7ad   : > { %v974_v12 = vpop.xlane.xlu1 %973 }
 0x7ae   : > { %v977_v13 = vmul.f32 %v975_v10, %v975_v10  ;;  %v976_v15 = vmul.f32 0.03125, %v974_v12  ;;  %v979_v18 = vsub.f32 %v967_v3, %v975_v10 }
 0x7b0   : > { %v978_v16 = vsub.f32 %v976_v15, %v977_v13 }
 0x7b2   : > { %v980_v17 = vadd.f32 1e-05, %v978_v16 }
 0x7b4   : > { %1400 = vrsqrt.f32 %v980_v17 }
 0x7be   : > { %v1401_v19 = vpop.eup %1400 }
 0x7bf   : > { %v982_v20 = vmul.f32 %v1401_v19, %v979_v18 }
 0x7c1   : > { %v989_v22 = vmul.f32 %v1081_v11, %v982_v20 }
 0x7c3   : > { %v996_v23 = vadd.f32 %v1082_v21, %v989_v22 }
 0x7c5   : > { %997 = vst [vmem:[%s377_s26] sm:$0xff] %v996_v23 }
 0x7c6   : > { %1415 = shalt.err (!%p1412_p3)
}
 0x7c7   : > { %s1416_s22 = scalar_lea.hbm %s1936_s0, 128  ;;  %s1420_s26 = scalar_lea.hbm %s1989_s11, 512 }
 0x7c8   : > { %p1417_p4 = scmp.ne.s32.totalorder %s1936_s0, %s1416_s22  ;;  %p1421_p9 = scmp.lt.u32.totalorder %s1936_s0, %s1989_s11 }
 0x7c9   : > { %p1422_p10 = scmp.lt.u32.totalorder %s1420_s26, %s1416_s22  ;;  %p1424_p12 = scmp.lt.u32.totalorder %s1416_s22, %s1936_s0 }
 0x7ca   : > { %p1418_p7 = pnand %p1417_p4, %p1568_p5 }
 0x7cb   : > { %p1423_p11 = por %p1422_p10, %p1421_p9 }
 0x7cc   : > { %p1419_p8 = pneg %p1418_p7 }
 0x7cd   : > { %p1425_p13 = por %p1424_p12, %p1423_p11 }
 0x7cf   : > { %p1426_p0 = pnand %p1425_p13, %p1419_p8 }
 0x7d1   : > { %1429 = shalt.err (!%p1426_p0)
}
 0x7d2   : > { %1352 = dma.vmem_to_hbm [thread:$0]  (%p1568_p5), %s1938_s14, 128, %s1936_s0, %s999_s29  }
 0x7d3 PF: > { %p1358_p1 = scmp.ge.s32.totalorder %s1464_s20, 2  ;;  %s1024_s24 = sand.u32 1, %s1452_s17  }
 0x7d4   : > { %s1025_s21 = scalar_lea.sflag [#allocation3], %s1024_s24 }
 0x7d5   : > { %p1355_p2 = pnand %p1358_p1, %p1572_p6 }
 0x7d7   : > { %1447 = dma.done.wait (!%p1355_p2), %s1025_s21, 128  }
 0x7d8   : > { %1449 = vsyncadd (!%p1355_p2), %s1025_s21, 4294967168  ;;  %s1995_s25 = sld [smem:[#allocation5_spill]]  ;;  %p21_p3 = scmp.ge.s32.totalorder %s1555_s23, 6  }
 0x7d9   : > { %s1996_s17 = smov %s1456_s18  ;;  %s1997_s18 = smov %s1460_s19 }
 0x7da   : > { %s1999_s20 = smov %s1555_s23  ;;  %23 = sbr.rel (!%p21_p3) target bundleno = 5 (0x5), region = 99 }
 0x7de   : > { %s1998_s19 = smov %s1995_s25 }
 0x7e1   :  { %1030 = vsyncpa [#allocation3], 1 }
 0x7e2   :  { %1032 = vsyncpa [#allocation3 + $0x1], 1 }

</bundles_post_ra>
